<compile_context>
chip_gen: v5e
topology: v5e:2x2
jax: 0.10.0
libtpu: 0.0.40
codegen_flags: <defaults>
</compile_context>

<pallas_src>
import jax
import jax.numpy as jnp
from jax import lax
from jax.experimental import pallas as pl
from jax.experimental.pallas import tpu as pltpu


def _round_up(x: int, m: int) -> int:
    return ((x + m - 1) // m) * m


def _pick_tk(fin: int, max_tk: int = 2048) -> int:
    """Largest K chunk <= max_tk that tiles Fin exactly (full Fin if small)."""
    if fin <= max_tk:
        return fin
    for tk in range(max_tk, 127, -128):
        if fin % tk == 0:
            return tk
    # TODO(synk): mask/pad a ragged Fin tail instead of falling back to full-K.
    return fin


def _norm_softmax_kernel(rx_ref, rw_ref, x_ref, w_ref, o_ref, acc_ref):
    """Computes one (tm, tn) logits tile; K (reduction) is grid axis 2."""
    k = pl.program_id(2)

    @pl.when(k == 0)
    def _():
        acc_ref[...] = jnp.zeros_like(acc_ref)

    # Raw (bf16) tiles feed the MXU directly; f32 accumulate.
    acc_ref[...] += jnp.dot(x_ref[...], w_ref[...],
                            preferred_element_type=jnp.float32)

    @pl.when(k == pl.num_programs(2) - 1)
    def _():
        # Epilogue: rows scaled by s/||x_i||, columns by 1/||w_j||
        # (both precomputed in f32 outside the grid loop).
        o_ref[...] = (acc_ref[...] * rx_ref[...] * rw_ref[...]).astype(o_ref.dtype)


def norm_softmax_layer(x, weight, s=16.0, *,
                       operand_dtype=jnp.bfloat16, out_dtype=jnp.float32):
    """Pallas implementation of NormSoftmaxLayer.forward (label unused, m=0)."""
    B, Fin = x.shape
    Fout, Fin_w = weight.shape
    assert Fin == Fin_w

    # ---- Tile sizes --------------------------------------------------------
    tm = min(512, _round_up(B, 8))          # batch tile (sublane-aligned)
    tn = min(1024, _round_up(Fout, 128))    # class tile (lane-dense stores)
    tk = _pick_tk(Fin)                      # reduction chunk (always divides Fin)

    b_pad = _round_up(B, tm)
    f_pad = _round_up(Fout, tn)
    num_i, num_j, num_k = b_pad // tm, f_pad // tn, Fin // tk

    # ---- Hoisted inverse norms (f32); the static scale s folds into rx ------
    # F.normalize eps is 1e-12 -> rsqrt(max(sum_sq, 1e-24)) == 1/max(||v||,eps).
    eps2 = jnp.float32(1e-24)
    xf = x.astype(jnp.float32)
    wf = weight.astype(jnp.float32)
    rx = jnp.float32(s) * lax.rsqrt(
        jnp.maximum(jnp.sum(xf * xf, axis=-1, keepdims=True), eps2))   # [B, 1]
    rw = lax.rsqrt(
        jnp.maximum(jnp.sum(wf * wf, axis=-1), eps2))[None, :]         # [1, Fout]

    # ---- Operand prep: bf16 cast, [Fin, Fout] weight layout, padding --------
    # TODO(synk): in a real module, store the weight pre-cast / pre-transposed /
    # pre-padded at init instead of materializing it every forward call.
    x_op = x
    if b_pad != B:
        x_op = jnp.pad(x_op, ((0, b_pad - B), (0, 0)))
        rx = jnp.pad(rx, ((0, b_pad - B), (0, 0)))
    x_op = x_op.astype(operand_dtype)

    w_op = weight.T.astype(operand_dtype)                              # [Fin, Fout]
    if f_pad != Fout:
        w_op = jnp.pad(w_op, ((0, 0), (0, f_pad - Fout)))
        rw = jnp.pad(rw, ((0, 0), (0, f_pad - Fout)))

    # ---- Grid order: keep the cheaper-to-hold operand resident --------------
    # Only matters when there is a single K block; with num_k > 1 both
    # operands stream once per outer iteration regardless of ordering.
    traffic_x_resident = b_pad * Fin + f_pad * Fin * num_i   # x held, W streamed
    traffic_w_resident = f_pad * Fin + b_pad * Fin * num_j   # W held, x streamed
    weight_resident = (num_k == 1) and (traffic_w_resident < traffic_x_resident)
    if weight_resident:
        grid = (num_j, num_i, num_k)
        rx_map = lambda j, i, k: (i, 0)
        rw_map = lambda j, i, k: (0, j)
        x_map = lambda j, i, k: (i, k)
        w_map = lambda j, i, k: (k, j)
        o_map = lambda j, i, k: (i, j)
    else:
        grid = (num_i, num_j, num_k)
        rx_map = lambda i, j, k: (i, 0)
        rw_map = lambda i, j, k: (0, j)
        x_map = lambda i, j, k: (i, k)
        w_map = lambda i, j, k: (k, j)
        o_map = lambda i, j, k: (i, j)

    # ---- Explicit VMEM budget (v5e default scoped limit is only 16 MiB;
    #      v7x physical VMEM is 64 MiB) ---------------------------------------
    op_bytes = jnp.dtype(operand_dtype).itemsize
    out_bytes = jnp.dtype(out_dtype).itemsize
    tile_bytes = (2 * (tm * tk + tk * tn) * op_bytes   # double-buffered operands
                  + 2 * (tm + tn) * 4                  # rx / rw tiles
                  + 2 * tm * tn * out_bytes            # output double buffer
                  + tm * tn * 4)                       # f32 accumulator scratch
    vmem_limit = int(min(max(2 * tile_bytes, 32 * 1024 * 1024),
                         48 * 1024 * 1024))

    cost = pl.CostEstimate(
        flops=2 * b_pad * f_pad * Fin,
        transcendentals=0,
        bytes_accessed=int(b_pad * Fin * op_bytes + f_pad * Fin * op_bytes
                           + b_pad * f_pad * out_bytes + (b_pad + f_pad) * 4),
    )

    out = pl.pallas_call(
        _norm_softmax_kernel,
        out_shape=jax.ShapeDtypeStruct((b_pad, f_pad), out_dtype),
        grid_spec=pltpu.PrefetchScalarGridSpec(
            num_scalar_prefetch=0,
            grid=grid,
            in_specs=[
                pl.BlockSpec((tm, 1), rx_map),
                pl.BlockSpec((1, tn), rw_map),
                pl.BlockSpec((tm, tk), x_map),
                pl.BlockSpec((tk, tn), w_map),
            ],
            out_specs=pl.BlockSpec((tm, tn), o_map),
            scratch_shapes=[pltpu.VMEM((tm, tn), jnp.float32)],
        ),
        compiler_params=pltpu.CompilerParams(
            # Row/class axes are independent (megacore-shardable on v7x when
            # the outer axis has >= 2 tiles); the K axis carries the
            # accumulator and must be "arbitrary".
            dimension_semantics=("parallel", "parallel", "arbitrary"),
            vmem_limit_bytes=vmem_limit,
        ),
        cost_estimate=cost,
    )(rx, rw, x_op, w_op)

    if b_pad != B or f_pad != Fout:
        out = out[:B, :Fout]
    return out


def xavier_uniform(key, shape, dtype=jnp.float32):
    # nn.init.xavier_uniform_ for a 2-D weight (out_features, in_features)
    fan_out, fan_in = shape
    bound = jnp.sqrt(6.0 / (fan_in + fan_out))
    return jax.random.uniform(key, shape, dtype=dtype, minval=-bound, maxval=bound)


def _reference(x, weight, s):
    # Pure-JAX reference mirroring the PyTorch forward.
    eps = 1e-12
    xn = x / jnp.maximum(jnp.linalg.norm(x, axis=-1, keepdims=True), eps)
    wn = weight / jnp.maximum(jnp.linalg.norm(weight, axis=-1, keepdims=True), eps)
    return (xn @ wn.T) * s


if __name__ == "__main__":
    key = jax.random.PRNGKey(0)
    k_x, k_w, k_lbl = jax.random.split(key, 3)

    batch = 8
    in_features = 32
    out_features = 16
    s = 16.0

    x = jax.random.normal(k_x, (batch, in_features), dtype=jnp.float32)
    weight = xavier_uniform(k_w, (out_features, in_features))
    # label is accepted by the PyTorch forward but unused (m = 0.0)
    label = jax.random.randint(k_lbl, (batch,), 0, out_features)

    ref = _reference(x, weight, s)

    # Fast path: bf16 MXU operands, f32 accumulate / f32 epilogue.
    out = jax.block_until_ready(norm_softmax_layer(x, weight, s=s))
    assert out.shape == (batch, out_features)
    assert jnp.allclose(out, ref, atol=5e-2, rtol=5e-2), "bf16 path mismatch"

    # Full-precision operand path (closely matches the PyTorch forward).
    out_f32 = jax.block_until_ready(
        norm_softmax_layer(x, weight, s=s, operand_dtype=jnp.float32))
    assert jnp.allclose(out_f32, ref, atol=2e-3, rtol=2e-3), "f32 path mismatch"

    print("KERNEL_OK")
</pallas_src>

<mosaic_0001>
module attributes {stable_mosaic.version = 11 : i64} {
  func.func @_norm_softmax_kernel(%arg0: i32, %arg1: i32, %arg2: i32, %arg3: memref<8x1xf32, #tpu.memory_space<vmem>>, %arg4: memref<1x128xf32, #tpu.memory_space<vmem>>, %arg5: memref<8x32xbf16, #tpu.memory_space<vmem>>, %arg6: memref<32x128xbf16, #tpu.memory_space<vmem>>, %arg7: memref<8x128xf32, #tpu.memory_space<vmem>>, %arg8: memref<8x128xf32, #tpu.memory_space<vmem>>) attributes {dimension_semantics = [#tpu.dimension_semantics<parallel>, #tpu.dimension_semantics<parallel>, #tpu.dimension_semantics<arbitrary>], iteration_bounds = array<i64: 1, 1, 1>, scalar_prefetch = 0 : i64, scratch_operands = 1 : i64, tpu.core_type = #tpu.core_type<tc>, window_params = [{transform_indices = @transform_0, window_bounds = array<i64: 8, 1>}, {transform_indices = @transform_1, window_bounds = array<i64: 1, 128>}, {transform_indices = @transform_2, window_bounds = array<i64: 8, 32>}, {transform_indices = @transform_3, window_bounds = array<i64: 32, 128>}, {transform_indices = @transform_4, window_bounds = array<i64: 8, 128>}]} {
    %c0_i32 = arith.constant 0 : i32
    %0 = arith.cmpi eq, %arg2, %c0_i32 : i32
    %1 = arith.extui %0 : i1 to i32
    %c0_i32_0 = arith.constant 0 : i32
    %2 = arith.cmpi ne, %1, %c0_i32_0 : i32
    scf.if %2 {
      %cst_10 = arith.constant 0.000000e+00 : f32
      %12 = vector.broadcast %cst_10 : f32 to vector<8x128xf32>
      %c0_11 = arith.constant 0 : index
      %c0_12 = arith.constant 0 : index
      %13 = vector.load %arg8[%c0_11, %c0_12] : memref<8x128xf32, #tpu.memory_space<vmem>>, vector<8x128xf32>
      tpu.vector_store %arg8[%c0_11, %c0_12], %12 {strides = array<i32>} : memref<8x128xf32, #tpu.memory_space<vmem>>, vector<8x128xf32>,
    } else {
    }
    %c0 = arith.constant 0 : index
    %c0_1 = arith.constant 0 : index
    %3 = vector.load %arg8[%c0, %c0_1] : memref<8x128xf32, #tpu.memory_space<vmem>>, vector<8x128xf32>
    %c0_2 = arith.constant 0 : index
    %c0_3 = arith.constant 0 : index
    %4 = vector.load %arg5[%c0_2, %c0_3] : memref<8x32xbf16, #tpu.memory_space<vmem>>, vector<8x32xbf16>
    %c0_4 = arith.constant 0 : index
    %c0_5 = arith.constant 0 : index
    %5 = vector.load %arg6[%c0_4, %c0_5] : memref<32x128xbf16, #tpu.memory_space<vmem>>, vector<32x128xbf16>
    %cst = arith.constant dense<0.000000e+00> : vector<8x128xf32>
    %6 = tpu.matmul %4, %5, %cst {dimension_numbers = #tpu.dot_dimension_numbers<[1], [0], [0], [1], [0, 0, 1, 1], [], []>} : vector<8x32xbf16>, vector<32x128xbf16>, vector<8x128xf32> -> vector<8x128xf32>
    %7 = arith.addf %3, %6 : vector<8x128xf32>
    %c0_6 = arith.constant 0 : index
    %c0_7 = arith.constant 0 : index
    %8 = vector.load %arg8[%c0_6, %c0_7] : memref<8x128xf32, #tpu.memory_space<vmem>>, vector<8x128xf32>
    tpu.vector_store %arg8[%c0_6, %c0_7], %7 {strides = array<i32>} : memref<8x128xf32, #tpu.memory_space<vmem>>, vector<8x128xf32>,
    %c0_i32_8 = arith.constant 0 : i32
    %9 = arith.cmpi eq, %arg2, %c0_i32_8 : i32
    %10 = arith.extui %9 : i1 to i32
    %c0_i32_9 = arith.constant 0 : i32
    %11 = arith.cmpi ne, %10, %c0_i32_9 : i32
    scf.if %11 {
      %c0_10 = arith.constant 0 : index
      %c0_11 = arith.constant 0 : index
      %12 = vector.load %arg8[%c0_10, %c0_11] : memref<8x128xf32, #tpu.memory_space<vmem>>, vector<8x128xf32>
      %c0_12 = arith.constant 0 : index
      %c0_13 = arith.constant 0 : index
      %13 = vector.load %arg3[%c0_12, %c0_13] : memref<8x1xf32, #tpu.memory_space<vmem>>, vector<8x1xf32>
      %14 = vector.broadcast %13 : vector<8x1xf32> to vector<8x128xf32>
      %15 = arith.mulf %12, %14 : vector<8x128xf32>
      %c0_14 = arith.constant 0 : index
      %c0_15 = arith.constant 0 : index
      %16 = vector.load %arg4[%c0_14, %c0_15] : memref<1x128xf32, #tpu.memory_space<vmem>>, vector<1x128xf32>
      %17 = vector.broadcast %16 : vector<1x128xf32> to vector<8x128xf32>
      %18 = arith.mulf %15, %17 : vector<8x128xf32>
      %c0_16 = arith.constant 0 : index
      %c0_17 = arith.constant 0 : index
      %19 = vector.load %arg7[%c0_16, %c0_17] : memref<8x128xf32, #tpu.memory_space<vmem>>, vector<8x128xf32>
      tpu.vector_store %arg7[%c0_16, %c0_17], %18 {strides = array<i32>} : memref<8x128xf32, #tpu.memory_space<vmem>>, vector<8x128xf32>,
    } else {
    }
    return
  }
  func.func @transform_0(%arg0: i32, %arg1: i32, %arg2: i32) -> (i32, i32) {
    %c0_i32 = arith.constant 0 : i32
    %c0_i32_0 = arith.constant 0 : i32
    return %arg0, %c0_i32 : i32, i32
  }
  func.func @transform_1(%arg0: i32, %arg1: i32, %arg2: i32) -> (i32, i32) {
    %c0_i32 = arith.constant 0 : i32
    %c0_i32_0 = arith.constant 0 : i32
    return %c0_i32, %arg1 : i32, i32
  }
  func.func @transform_2(%arg0: i32, %arg1: i32, %arg2: i32) -> (i32, i32) {
    %c0_i32 = arith.constant 0 : i32
    return %arg0, %arg2 : i32, i32
  }
  func.func @transform_3(%arg0: i32, %arg1: i32, %arg2: i32) -> (i32, i32) {
    %c0_i32 = arith.constant 0 : i32
    return %arg2, %arg1 : i32, i32
  }
  func.func @transform_4(%arg0: i32, %arg1: i32, %arg2: i32) -> (i32, i32) {
    %c0_i32 = arith.constant 0 : i32
    return %arg0, %arg1 : i32, i32
  }
}

</mosaic_0001>

<bundles_post_ra>
// kernel: tpu_custom_call.1
= control target key start
LH: loop header
LB: loop body
LE: loop exit
PB: predicated region body
PF: predicated region fallthrough
CT: control target
= control target key end

     0   :  { %9 = vsyncpa [#allocation4], 0  ;;  %s226_s0 = inlined_call_operand.vmem [shape: f32[8,1], index: 0, kind: input, shape index: {}]   ;;  %s227_s1 = inlined_call_operand.vmem [shape: f32[1,128], index: 1, kind: input, shape index: {}]   ;;  %s228_s2 = inlined_call_operand.vmem [shape: bf16[8,32], index: 2, kind: input, shape index: {}]   ;;  %s229_s3 = inlined_call_operand.hbm [shape: bf16[32,128], index: 3, kind: input, shape index: {}]   ;;  %s230_s4 = inlined_call_operand.hbm [shape: f32[8,128], index: 4, kind: output, shape index: {}]  }
   0x1   :  { %10 = vsyncpa [#allocation5], 0  ;;  %s21_s17 = sshll.u32 %s229_s3, 4  ;;  %s181_s18 = smov [#allocation3]   ;;  %s22_s17 = int_to_ptr.hbm [resolvable:$true] %s21_s17 }
   0x2   :  { %s23_s19 = sshll.u32 %s181_s18, 4  ;;  %s182_s20 = smov 64   ;;  %s24_s19 = int_to_ptr.vmem [resolvable:$true] %s23_s19 }
   0x3   :  { %s183_s21 = smov 4  }
   0x4   :  { %29 = dma.hbm_to_vmem [thread:$0]  %s22_s17, 256, %s24_s19, [#allocation4], %s182_s20, %s182_s20, %s183_s21  }
   0x5   :  { %177 = dma.done.wait [#allocation4], 256  }
   0x6   :  { %178 = vsyncadd [#allocation4], 4294967040  ;;  %v184_v0 = vmov 0   ;;  %v121_v1 = vld [vmem:[#allocation3 + $0x8] sm:$0xff]  ;;  %v81_v2 = vld [vmem:[%s226_s0] sm:$0xff]  ;;  %vm58_vm0 = vcmask 261120  }
   0x7   :  { %127 = vset.pattern.permute.xlu0 %v184_v0  ;;  %68 = vmatpush.bf16.msra.mxu0 %v121_v1  ;;  %v120_v3 = vld [vmem:[#allocation3] sm:$0xff]  ;;  %s185_s27 = smov [#allocation6]   ;;  %s101_s30 = sshll.u32 %s230_s4, 4  ;;  %s102_s30 = int_to_ptr.hbm [resolvable:$true] %s101_s30 }
   0x8   :  { %84 = vperm.xlu0 %127, %v81_v2   ;;  %v41_v4 = vld [vmem:[%s228_s2] sm:$0xf]  ;;  %s99_s28 = sshll.u32 %s185_s27, 4  ;;  %s100_s28 = int_to_ptr.vmem [resolvable:$true] %s99_s28 }
   0x9   :  { %v128_v6 = vld [vmem:[%s227_s1] ss:$0 sm:$0xff] }
   0xb   :  { %69 = vmatpush.bf16.msra.mxu0 %v120_v3 }
   0xe   :  { %119 = vmatmul.msk.bf16.vlgmr.msra.gmra.mxu0 %vm58_vm0, %v41_v4 }
  0x7a   :  { %v85_v5 = vpop.permute.xlu0 %84 }
  0x8b   :  { %v71_v7 = vpop.f32.mrf.mxu0 }
  0x8c   :  { %v87_v8 = vmul.f32 %v85_v5, %v71_v7 }
  0x8e   :  { %v92_v9 = vmul.f32 %v128_v6, %v87_v8 }
  0x90   :  { %93 = vst [vmem:[#allocation6] sm:$0xff] %v92_v9 }
  0x91   :  { %104 = dma.vmem_to_hbm [thread:$0]  %s100_s28, 128, %s102_s30, [#allocation5]  }
  0x93   :  { %v73_v10 = vpop.f32.mrf.mxu0 }
  0x94   :  { %179 = dma.done.wait [#allocation5], 128  }
  0x95   :  { %180 = vsyncadd [#allocation5], 4294967168 }
  0x96   :  { %109 = vsyncpa [#allocation4], 1 }
  0x97   :  { %110 = vsyncpa [#allocation5], 1 }

</bundles_post_ra>
